<compile_context>
chip_gen: v6e
topology: v6e:2x2x1
jax: 0.10.0
libtpu: 0.0.40
codegen_flags: <defaults>
</compile_context>

<pallas_src>
import jax
import jax.numpy as jnp
from jax import lax
from jax.experimental import pallas as pl
from jax.experimental.pallas import tpu as pltpu


def _banded_weight(w, width):
    """Fold a KHxKW 'SAME' conv weight into per-kh block-Toeplitz matmul weights.

    w: (KH, KW, Cin, Cout) -> (KH, width*Cin, width*Cout) with
       out[kh, q*Cin+ci, wo*Cout+co] = w[kh, kw, ci, co]  where q = wo + kw - pad,
    out-of-range q (horizontal zero padding) dropped.  Masked adds only, runs once.
    """
    KH, KW, Cin, Cout = w.shape
    pad = (KW - 1) // 2
    q = jnp.arange(width)[:, None, None, None]     # source column index
    wo = jnp.arange(width)[None, None, :, None]    # output column index
    big = jnp.zeros((KH, width, Cin, width, Cout), w.dtype)
    for kw in range(KW):
        m = (q == wo + (kw - pad))                               # (width,1,width,1)
        big = big + jnp.where(m, w[:, kw][:, None, :, None, :], 0.0)
    return big.reshape(KH, width * Cin, width * Cout)


def prepare_feature_extractor_params(params, W):
    """One-time parameter preprocessing (hoisted out of the per-forward path).

    Builds the block-Toeplitz conv weights with the KH taps folded along K (so each
    conv is a single MXU matmul), casts them to bf16 for the MXU, and pre-tiles the
    biases into lane-dense f32 rows for the f32 epilogue.
    """
    KH, KW, Cin, C1 = params["w1"].shape
    C2 = params["w2"].shape[-1]
    w1b = _banded_weight(params["w1"].astype(jnp.float32), W)    # (KH, W*Cin, W*C1)
    w2b = _banded_weight(params["w2"].astype(jnp.float32), W)    # (KH, W*C1,  W*C2)
    return {
        "w1_fold": w1b.reshape(KH * W * Cin, W * C1).astype(jnp.bfloat16),
        "w2_fold": w2b.reshape(KH * W * C1, W * C2).astype(jnp.bfloat16),
        "b1_row": jnp.tile(params["b1"].astype(jnp.float32), W).reshape(1, W * C1),
        "b2_row": jnp.tile(params["b2"].astype(jnp.float32), W).reshape(1, W * C2),
    }


def _pick_batch_tile(N, H, target_rows=256):
    """Batch elements per grid step so one MXU push covers Bt*H rows (M dimension).

    Aims at ~target_rows rows per matmul (256-tall MXU on v6e/v7x); falls back to a
    divisor of N.  For large N the resulting grid stays >= 2, keeping both v7x
    TensorCores busy via dimension_semantics=('parallel',).
    """
    bt = max(1, min(N, max(1, target_rows // H)))
    while N % bt:
        bt -= 1
    return bt


def _make_fused_kernel(Bt, H, W, Cin, C1, C2, KH=3):
    """Fused conv1+ReLU -> conv2+ReLU kernel for Bt batch elements (M = Bt*H rows)."""
    M = Bt * H
    N1 = W * C1

    def kernel(x_ref, w1_ref, b1_ref, w2_ref, b2_ref, o1_ref, o2_ref):
        # x_ref : (M, KH*W*Cin)    bf16  im2row'd input rows (built in wrapper)
        # w1_ref: (KH*W*Cin, W*C1) bf16  folded banded weight, stage 1
        # b1_ref: (1, W*C1)        f32   pre-tiled bias row
        # w2_ref: (KH*W*C1, W*C2)  bf16  folded banded weight, stage 2
        # b2_ref: (1, W*C2)        f32
        # o1_ref: (M, W*C1) f32 ; o2_ref: (M, W*C2) f32   lane-dense outputs

        # ---- stage 1: single MXU push, M=Bt*H, K=KH*W*Cin, f32 accumulate ----
        acc1 = jnp.dot(x_ref[...], w1_ref[...], preferred_element_type=jnp.float32)
        f1 = jnp.maximum(acc1 + b1_ref[...], 0.0)          # f32 epilogue: bias + ReLU
        o1_ref[...] = f1

        # ---- stage 2 im2row on the VMEM-resident f1 (no HBM round-trip) ----
        # Vertical SAME padding via sublane rolls (XLU) + border masks: no zero-row
        # concatenate, no unaligned sublane slices.  Row r belongs to image r//H; the
        # masks zero both the per-image border rows and any cross-image / wrap-around
        # rows introduced by the roll.
        h = lax.broadcasted_iota(jnp.int32, (M, N1), 0) % H
        top = jnp.where(h >= 1,     pltpu.roll(f1, 1,     axis=0), 0.0)   # f1[h-1]
        bot = jnp.where(h <= H - 2, pltpu.roll(f1, M - 1, axis=0), 0.0)   # f1[h+1]
        lhs2 = jnp.concatenate([top, f1, bot], axis=1).astype(jnp.bfloat16)  # (M, KH*W*C1)

        acc2 = jnp.dot(lhs2, w2_ref[...], preferred_element_type=jnp.float32)
        o2_ref[...] = jnp.maximum(acc2 + b2_ref[...], 0.0)

    return kernel


@jax.jit
def feature_extractor_forward(x_nchw, prep):
    """Mirror of FeatureExtractor.forward: returns [feat1, feat2] (NCHW)."""
    N, Cin, H, W = x_nchw.shape
    KH = 3
    C1 = prep["b1_row"].shape[-1] // W
    C2 = prep["b2_row"].shape[-1] // W
    assert H % 8 == 0, "H must be a multiple of 8 for clean (8,128) tiling"

    # Wrapper-side layout plumbing (fused under jit): NCHW -> lane-dense NHWC rows,
    # vertical SAME pad, im2row over the KH row taps, bf16 cast, batch folded into rows.
    x_rows = jnp.transpose(x_nchw, (0, 2, 3, 1)).reshape(N, H, W * Cin)
    xpad = jnp.pad(x_rows, ((0, 0), (1, 1), (0, 0)))                  # (N, H+2, W*Cin)
    lhs1 = jnp.concatenate([xpad[:, kh:kh + H] for kh in range(KH)], axis=-1)
    lhs1 = lhs1.reshape(N * H, KH * W * Cin).astype(jnp.bfloat16)

    Bt = _pick_batch_tile(N, H)
    M = Bt * H
    grid = (N // Bt,)

    kernel = _make_fused_kernel(Bt, H, W, Cin, C1, C2, KH)
    o1, o2 = pl.pallas_call(
        kernel,
        out_shape=(jax.ShapeDtypeStruct((N * H, W * C1), jnp.float32),
                   jax.ShapeDtypeStruct((N * H, W * C2), jnp.float32)),
        grid_spec=pltpu.PrefetchScalarGridSpec(
            num_scalar_prefetch=0,
            grid=grid,
            in_specs=[
                pl.BlockSpec((M, KH * W * Cin), lambda n: (n, 0)),
                # Grid-invariant specs (constant index_map): weights/biases are fetched
                # once and stay VMEM-resident across grid steps.
                # TODO(synk): for much larger W/Cout, add pipeline_mode=pl.Buffered(1)
                # here to single-buffer the invariant weights (v7x 64 MiB VMEM budget).
                pl.BlockSpec((KH * W * Cin, W * C1), lambda n: (0, 0)),
                pl.BlockSpec((1, W * C1), lambda n: (0, 0)),
                pl.BlockSpec((KH * W * C1, W * C2), lambda n: (0, 0)),
                pl.BlockSpec((1, W * C2), lambda n: (0, 0)),
            ],
            out_specs=[
                pl.BlockSpec((M, W * C1), lambda n: (n, 0)),
                pl.BlockSpec((M, W * C2), lambda n: (n, 0)),
            ],
        ),
        compiler_params=pltpu.CompilerParams(
            dimension_semantics=("parallel",)),   # batch-tile axis -> 2 TCs on v7x when grid >= 2
    )(lhs1, prep["w1_fold"], prep["b1_row"], prep["w2_fold"], prep["b2_row"])

    # PyTorch-convention NCHW features, matching list(IntermediateLayerGetter(x).values()).
    # TODO(synk): if the downstream consumer accepts NHWC / lane-dense (N*H, W*C) slabs,
    # return o1/o2 directly and drop these transposes (they rewrite both maps through HBM).
    feat1 = jnp.transpose(o1.reshape(N, H, W, C1), (0, 3, 1, 2))
    feat2 = jnp.transpose(o2.reshape(N, H, W, C2), (0, 3, 1, 2))
    return [feat1, feat2]


def _reference_forward(x_nchw, params):
    """Pure-JAX reference (lax.conv, f32 HIGHEST) for correctness checking."""
    def conv(x, w, b):
        w_oihw = jnp.transpose(w, (3, 2, 0, 1))
        y = lax.conv_general_dilated(
            x, w_oihw, window_strides=(1, 1), padding="SAME",
            dimension_numbers=("NCHW", "OIHW", "NCHW"),
            precision=lax.Precision.HIGHEST)
        return jnp.maximum(y + b[None, :, None, None], 0.0)
    f1 = conv(x_nchw, params["w1"], params["b1"])
    f2 = conv(f1, params["w2"], params["b2"])
    return [f1, f2]


if __name__ == "__main__":
    key = jax.random.PRNGKey(0)
    k_x, k_w1, k_b1, k_w2, k_b2 = jax.random.split(key, 5)

    N, Cin, H, W = 2, 4, 16, 16
    C1, C2 = 8, 16

    x = jax.random.normal(k_x, (N, Cin, H, W), dtype=jnp.float32)
    params = {
        "w1": 0.1 * jax.random.normal(k_w1, (3, 3, Cin, C1), dtype=jnp.float32),
        "b1": 0.1 * jax.random.normal(k_b1, (C1,), dtype=jnp.float32),
        "w2": 0.1 * jax.random.normal(k_w2, (3, 3, C1, C2), dtype=jnp.float32),
        "b2": 0.1 * jax.random.normal(k_b2, (C2,), dtype=jnp.float32),
    }

    # One-time parameter prep (hoisted out of the forward path).
    prep = prepare_feature_extractor_params(params, W)

    feats = feature_extractor_forward(x, prep)
    feats = [jax.block_until_ready(f) for f in feats]

    refs = _reference_forward(x, params)
    for f, r in zip(feats, refs):
        assert f.shape == r.shape
        err = float(jnp.max(jnp.abs(f - r)))
        # bf16 matmul operands with f32 accumulation: expected max abs error ~1e-3.
        assert err < 2e-2, f"max abs err {err}"

    print("KERNEL_OK")
</pallas_src>

<mosaic_0001>
module attributes {stable_mosaic.version = 11 : i64} {
  func.func @kernel(%arg0: i32, %arg1: memref<32x192xbf16, #tpu.memory_space<vmem>>, %arg2: memref<192x128xbf16, #tpu.memory_space<vmem>>, %arg3: memref<1x128xf32, #tpu.memory_space<vmem>>, %arg4: memref<384x256xbf16, #tpu.memory_space<vmem>>, %arg5: memref<1x256xf32, #tpu.memory_space<vmem>>, %arg6: memref<32x128xf32, #tpu.memory_space<vmem>>, %arg7: memref<32x256xf32, #tpu.memory_space<vmem>>) attributes {dimension_semantics = [#tpu.dimension_semantics<parallel>], iteration_bounds = array<i64: 1>, scalar_prefetch = 0 : i64, scratch_operands = 0 : i64, tpu.core_type = #tpu.core_type<tc>, window_params = [{transform_indices = @transform_0, window_bounds = array<i64: 32, 192>}, {pipeline_mode = #tpu.pipeline_mode<synchronous>, transform_indices = @transform_1, window_bounds = array<i64: 192, 128>}, {pipeline_mode = #tpu.pipeline_mode<synchronous>, transform_indices = @transform_2, window_bounds = array<i64: 1, 128>}, {pipeline_mode = #tpu.pipeline_mode<synchronous>, transform_indices = @transform_3, window_bounds = array<i64: 384, 256>}, {pipeline_mode = #tpu.pipeline_mode<synchronous>, transform_indices = @transform_4, window_bounds = array<i64: 1, 256>}, {transform_indices = @transform_5, window_bounds = array<i64: 32, 128>}, {transform_indices = @transform_6, window_bounds = array<i64: 32, 256>}]} {
    %c0 = arith.constant 0 : index
    %c0_0 = arith.constant 0 : index
    %0 = vector.load %arg1[%c0, %c0_0] : memref<32x192xbf16, #tpu.memory_space<vmem>>, vector<32x192xbf16>
    %c0_1 = arith.constant 0 : index
    %c0_2 = arith.constant 0 : index
    %1 = vector.load %arg2[%c0_1, %c0_2] : memref<192x128xbf16, #tpu.memory_space<vmem>>, vector<192x128xbf16>
    %cst = arith.constant dense<0.000000e+00> : vector<32x128xf32>
    %2 = tpu.matmul %0, %1, %cst {dimension_numbers = #tpu.dot_dimension_numbers<[1], [0], [0], [1], [0, 0, 1, 1], [], []>} : vector<32x192xbf16>, vector<192x128xbf16>, vector<32x128xf32> -> vector<32x128xf32>
    %c0_3 = arith.constant 0 : index
    %c0_4 = arith.constant 0 : index
    %3 = vector.load %arg3[%c0_3, %c0_4] : memref<1x128xf32, #tpu.memory_space<vmem>>, vector<1x128xf32>
    %4 = vector.broadcast %3 : vector<1x128xf32> to vector<32x128xf32>
    %5 = arith.addf %2, %4 : vector<32x128xf32>
    %cst_5 = arith.constant 0.000000e+00 : f32
    %6 = vector.broadcast %cst_5 : f32 to vector<32x128xf32>
    %7 = arith.maximumf %5, %6 : vector<32x128xf32>
    %c0_6 = arith.constant 0 : index
    %c0_7 = arith.constant 0 : index
    %8 = vector.load %arg6[%c0_6, %c0_7] : memref<32x128xf32, #tpu.memory_space<vmem>>, vector<32x128xf32>
    tpu.vector_store %arg6[%c0_6, %c0_7], %7 {strides = array<i32>} : memref<32x128xf32, #tpu.memory_space<vmem>>, vector<32x128xf32>,
    %9 = tpu.iota {dimensions = array<i32: 0>} : vector<32x128xi32>
    %c16_i32 = arith.constant 16 : i32
    %c0_i32 = arith.constant 0 : i32
    %10 = arith.cmpi eq, %c16_i32, %c0_i32 : i32
    %c1_i32 = arith.constant 1 : i32
    %11 = arith.select %10, %c1_i32, %c16_i32 : i32
    %12 = vector.broadcast %11 : i32 to vector<32x128xi32>
    %13 = arith.remsi %9, %12 : vector<32x128xi32>
    %c0_i32_8 = arith.constant 0 : i32
    %14 = vector.broadcast %c0_i32_8 : i32 to vector<32x128xi32>
    %15 = arith.cmpi ne, %13, %14 : vector<32x128xi32>
    %c0_i32_9 = arith.constant 0 : i32
    %16 = vector.broadcast %c0_i32_9 : i32 to vector<32x128xi32>
    %17 = arith.cmpi slt, %13, %16 : vector<32x128xi32>
    %c0_i32_10 = arith.constant 0 : i32
    %18 = arith.cmpi slt, %11, %c0_i32_10 : i32
    %19 = vector.broadcast %18 : i1 to vector<32x128xi1>
    %20 = vector.broadcast %19 : vector<32x128xi1> to vector<32x128xi1>
    %21 = arith.xori %17, %20 : vector<32x128xi1>
    %22 = arith.andi %21, %15 : vector<32x128xi1>
    %23 = vector.broadcast %11 : i32 to vector<32x128xi32>
    %24 = arith.addi %13, %23 : vector<32x128xi32>
    %25 = arith.select %22, %24, %13 : vector<32x128xi1>, vector<32x128xi32>
    %c1_i32_11 = arith.constant 1 : i32
    %26 = vector.broadcast %c1_i32_11 : i32 to vector<32x128xi32>
    %27 = arith.cmpi sge, %25, %26 : vector<32x128xi32>
    %c1_i32_12 = arith.constant 1 : i32
    %28 = tpu.dynamic_rotate %7 by %c1_i32_12 dim 0 : vector<32x128xf32>, i32 -> vector<32x128xf32>
    %cst_13 = arith.constant 0.000000e+00 : f32
    %29 = vector.broadcast %cst_13 : f32 to vector<32x128xf32>
    %30 = arith.select %27, %28, %29 : vector<32x128xi1>, vector<32x128xf32>
    %c14_i32 = arith.constant 14 : i32
    %31 = vector.broadcast %c14_i32 : i32 to vector<32x128xi32>
    %32 = arith.cmpi sle, %25, %31 : vector<32x128xi32>
    %c31_i32 = arith.constant 31 : i32
    %33 = tpu.dynamic_rotate %7 by %c31_i32 dim 0 : vector<32x128xf32>, i32 -> vector<32x128xf32>
    %cst_14 = arith.constant 0.000000e+00 : f32
    %34 = vector.broadcast %cst_14 : f32 to vector<32x128xf32>
    %35 = arith.select %32, %33, %34 : vector<32x128xi1>, vector<32x128xf32>
    %36 = tpu.concatenate %30, %7, %35 in 1 : vector<32x128xf32>, vector<32x128xf32>, vector<32x128xf32> -> vector<32x384xf32>
    %37 = arith.truncf %36 : vector<32x384xf32> to vector<32x384xbf16>
    %c0_15 = arith.constant 0 : index
    %c0_16 = arith.constant 0 : index
    %38 = vector.load %arg4[%c0_15, %c0_16] : memref<384x256xbf16, #tpu.memory_space<vmem>>, vector<384x256xbf16>
    %cst_17 = arith.constant dense<0.000000e+00> : vector<32x256xf32>
    %39 = tpu.matmul %37, %38, %cst_17 {dimension_numbers = #tpu.dot_dimension_numbers<[1], [0], [0], [1], [0, 0, 1, 1], [], []>} : vector<32x384xbf16>, vector<384x256xbf16>, vector<32x256xf32> -> vector<32x256xf32>
    %c0_18 = arith.constant 0 : index
    %c0_19 = arith.constant 0 : index
    %40 = vector.load %arg5[%c0_18, %c0_19] : memref<1x256xf32, #tpu.memory_space<vmem>>, vector<1x256xf32>
    %41 = vector.broadcast %40 : vector<1x256xf32> to vector<32x256xf32>
    %42 = arith.addf %39, %41 : vector<32x256xf32>
    %cst_20 = arith.constant 0.000000e+00 : f32
    %43 = vector.broadcast %cst_20 : f32 to vector<32x256xf32>
    %44 = arith.maximumf %42, %43 : vector<32x256xf32>
    %c0_21 = arith.constant 0 : index
    %c0_22 = arith.constant 0 : index
    %45 = vector.load %arg7[%c0_21, %c0_22] : memref<32x256xf32, #tpu.memory_space<vmem>>, vector<32x256xf32>
    tpu.vector_store %arg7[%c0_21, %c0_22], %44 {strides = array<i32>} : memref<32x256xf32, #tpu.memory_space<vmem>>, vector<32x256xf32>,
    return
  }
  func.func @transform_0(%arg0: i32) -> (i32, i32) {
    %c0_i32 = arith.constant 0 : i32
    %c0_i32_0 = arith.constant 0 : i32
    return %arg0, %c0_i32 : i32, i32
  }
  func.func @transform_1(%arg0: i32) -> (i32, i32) {
    %c0_i32 = arith.constant 0 : i32
    %c0_i32_0 = arith.constant 0 : i32
    %c0_i32_1 = arith.constant 0 : i32
    return %c0_i32, %c0_i32_0 : i32, i32
  }
  func.func @transform_2(%arg0: i32) -> (i32, i32) {
    %c0_i32 = arith.constant 0 : i32
    %c0_i32_0 = arith.constant 0 : i32
    %c0_i32_1 = arith.constant 0 : i32
    return %c0_i32, %c0_i32_0 : i32, i32
  }
  func.func @transform_3(%arg0: i32) -> (i32, i32) {
    %c0_i32 = arith.constant 0 : i32
    %c0_i32_0 = arith.constant 0 : i32
    %c0_i32_1 = arith.constant 0 : i32
    return %c0_i32, %c0_i32_0 : i32, i32
  }
  func.func @transform_4(%arg0: i32) -> (i32, i32) {
    %c0_i32 = arith.constant 0 : i32
    %c0_i32_0 = arith.constant 0 : i32
    %c0_i32_1 = arith.constant 0 : i32
    return %c0_i32, %c0_i32_0 : i32, i32
  }
  func.func @transform_5(%arg0: i32) -> (i32, i32) {
    %c0_i32 = arith.constant 0 : i32
    %c0_i32_0 = arith.constant 0 : i32
    return %arg0, %c0_i32 : i32, i32
  }
  func.func @transform_6(%arg0: i32) -> (i32, i32) {
    %c0_i32 = arith.constant 0 : i32
    %c0_i32_0 = arith.constant 0 : i32
    return %arg0, %c0_i32 : i32, i32
  }
}

</mosaic_0001>

<bundles_post_ra>
// kernel: feature_extractor_forward.1
= control target key start
LH: loop header
LB: loop body
LE: loop exit
PB: predicated region body
PF: predicated region fallthrough
CT: control target
= control target key end

     0   :  { %v906_v0 = vmov 0   ;;  %vm148_vm0 = vcmask 523264   ;;  %vm907_vm4 = vmmov 1   ;;  %s1223_s1 = inlined_call_operand.vmem [shape: bf16[192,128], index: 1, kind: input, shape index: {}]   ;;  %s1224_s0 = inlined_call_operand.vmem [shape: bf16[32,192], index: 0, kind: input, shape index: {}]   ;;  %s1225_s3 = inlined_call_operand.vmem [shape: bf16[384,256], index: 3, kind: input, shape index: {}]   ;;  %s1226_s2 = inlined_call_operand.vmem [shape: f32[1,128], index: 2, kind: input, shape index: {}]   ;;  %s1227_s5 = inlined_call_operand.vmem [shape: f32[32,128], index: 5, kind: output, shape index: {0}]   ;;  %s1228_s4 = inlined_call_operand.vmem [shape: f32[1,256], index: 4, kind: input, shape index: {}]   ;;  %s1229_s6 = inlined_call_operand.vmem [shape: f32[32,256], index: 6, kind: output, shape index: {1}]  }
   0x1   :  { %155 = vmatprep.subr.bf16.mxu0 %v906_v0  ;;  %v816_v1 = vld [vmem:[%s1223_s1 + $0x38] sm:$0xff]   ;;  %v817_v2 = vld [vmem:[%s1223_s1 + $0x30] sm:$0xff]   ;;  %v818_v3 = vld [vmem:[%s1223_s1 + $0x28] sm:$0xff]  }
   0x2   :  { %156 = vmatpush1.bf16.msra.mxu0 %v816_v1  ;;  %v819_v4 = vld [vmem:[%s1223_s1 + $0x20] sm:$0xff]   ;;  %v820_v6 = vld [vmem:[%s1223_s1 + $0x18] sm:$0xff]   ;;  %v821_v10 = vld [vmem:[%s1223_s1 + $0x10] sm:$0xff]  }
   0x3   :  { %157 = vmatprep.subr.bf16.mxu0 %v906_v0  ;;  %v830_v5 = vld [vmem:[%s1224_s0 + $0x4] ss:$8 sps:$4 sm:$0xff]   ;;  %v834_v7 = vld [vmem:[%s1225_s3 + $0x74] ss:$8 sps:$4 sm:$0xff]   ;;  %v836_v8 = vld [vmem:[%s1225_s3 + $0x70] ss:$8 sps:$4 sm:$0xff]  }
   0x4   :  { %752 = vmatprep.mubr.msk.bf16.mxu0 %vm148_vm0, %v830_v5  ;;  %v837_v9 = vld [vmem:[%s1225_s3 + $0x64] ss:$8 sps:$4 sm:$0xff]   ;;  %605 = vmatprep.subr.bf16.mxu1 %v834_v7  ;;  %v839_v11 = vld [vmem:[%s1225_s3 + $0x60] ss:$8 sps:$4 sm:$0xff]   ;;  %v840_v12 = vld [vmem:[%s1225_s3 + $0x54] ss:$8 sps:$4 sm:$0xff]  }
   0x5   :  { %606 = vmatpush1.bf16.msra.mxu1 %v836_v8  ;;  %v822_v13 = vld [vmem:[%s1223_s1 + $0x8] sm:$0xff]   ;;  %v842_v14 = vld [vmem:[%s1225_s3 + $0x50] ss:$8 sps:$4 sm:$0xff]   ;;  %v823_v16 = vld [vmem:[%s1223_s1] sm:$0xff]  }
   0x6   :  { %158 = vmatpush1.bf16.msra.mxu0 %v817_v2  ;;  %607 = vmatprep.subr.bf16.mxu1 %v837_v9  ;;  %v843_v15 = vld [vmem:[%s1225_s3 + $0x44] ss:$8 sps:$4 sm:$0xff]   ;;  %v845_v17 = vld [vmem:[%s1225_s3 + $0x40] ss:$8 sps:$4 sm:$0xff]   ;;  %v846_v18 = vld [vmem:[%s1225_s3 + $0x34] ss:$8 sps:$4 sm:$0xff]  }
   0x7   :  { %159 = vmatprep.subr.bf16.mxu0 %v906_v0  ;;  %v824_v19 = vld [vmem:[%s1223_s1 + $0x58] sm:$0xff]   ;;  %v849_v21 = vld [vmem:[%s1225_s3 + $0x24] ss:$8 sps:$4 sm:$0xff]   ;;  %v825_v22 = vld [vmem:[%s1223_s1 + $0x50] sm:$0xff]  }
   0x8   :  { %v848_v20 = vld [vmem:[%s1225_s3 + $0x30] ss:$8 sps:$4 sm:$0xff]   ;;  %v851_v23 = vld [vmem:[%s1225_s3 + $0x20] ss:$8 sps:$4 sm:$0xff]   ;;  %v852_v24 = vld [vmem:[%s1225_s3 + $0x14] ss:$8 sps:$4 sm:$0xff]  }
   0x9   :  { %608 = vmatpush1.bf16.msra.mxu1 %v839_v11  ;;  %v826_v25 = vld [vmem:[%s1223_s1 + $0x48] sm:$0xff]   ;;  %v854_v26 = vld [vmem:[%s1225_s3 + $0x10] ss:$8 sps:$4 sm:$0xff]   ;;  %v827_v28 = vld [vmem:[%s1223_s1 + $0x40] sm:$0xff]  }
   0xa   :  { %160 = vmatpush1.bf16.msra.mxu0 %v818_v3  ;;  %609 = vmatprep.subr.bf16.mxu1 %v840_v12  ;;  %v855_v27 = vld [vmem:[%s1225_s3 + $0x4] ss:$8 sps:$4 sm:$0xff]   ;;  %v860_v29 = vld [vmem:[%s1225_s3] ss:$8 sps:$4 sm:$0xff]   ;;  %v859_v30 = vld [vmem:[%s1225_s3 + $0x174] ss:$8 sps:$4 sm:$0xff]   ;;  %v212_v3 = vlaneseq }
   0xb   :  { %161 = vmatprep.subr.bf16.mxu0 %v906_v0  ;;  %v861_v31 = vld [vmem:[%s1225_s3 + $0xf4] ss:$8 sps:$4 sm:$0xff]   ;;  %v828_v32 = vld [vmem:[%s1224_s0] ss:$8 sps:$4 sm:$0xff]   ;;  %v857_v34 = vld [vmem:[%s1225_s3 + $0x170] ss:$8 sps:$4 sm:$0xff]  }
   0xc   :  { %v831_v33 = vld [vmem:[%s1224_s0 + $0x14] ss:$8 sps:$4 sm:$0xff]   ;;  %v865_v35 = vld [vmem:[%s1225_s3 + $0x164] ss:$8 sps:$4 sm:$0xff]   ;;  %v866_v36 = vld [vmem:[%s1225_s3 + $0xf0] ss:$8 sps:$4 sm:$0xff]  }
   0xd   :  { %610 = vmatpush1.bf16.msra.mxu1 %v842_v14  ;;  %v867_v37 = vld [vmem:[%s1225_s3 + $0xe4] ss:$8 sps:$4 sm:$0xff]   ;;  %v863_v38 = vld [vmem:[%s1225_s3 + $0x160] ss:$8 sps:$4 sm:$0xff]   ;;  %v871_v39 = vld [vmem:[%s1225_s3 + $0x154] ss:$8 sps:$4 sm:$0xff]  }
   0xe   :  { %162 = vmatpush1.bf16.msra.mxu0 %v819_v4  ;;  %611 = vmatprep.subr.bf16.mxu1 %v843_v15  ;;  %v872_v40 = vld [vmem:[%s1225_s3 + $0xe0] ss:$8 sps:$4 sm:$0xff]   ;;  %v873_v41 = vld [vmem:[%s1225_s3 + $0xd4] ss:$8 sps:$4 sm:$0xff]   ;;  %v833_v42 = vld [vmem:[%s1224_s0 + $0x10] ss:$8 sps:$4 sm:$0xff]  }
   0xf   :  { %163 = vmatprep.subr.bf16.mxu0 %v906_v0  ;;  %v869_v43 = vld [vmem:[%s1225_s3 + $0x150] ss:$8 sps:$4 sm:$0xff]   ;;  %v877_v44 = vld [vmem:[%s1225_s3 + $0x144] ss:$8 sps:$4 sm:$0xff]   ;;  %v875_v46 = vld [vmem:[%s1225_s3 + $0x140] ss:$8 sps:$4 sm:$0xff]  }
  0x10   :  { %v878_v45 = vld [vmem:[%s1225_s3 + $0xd0] ss:$8 sps:$4 sm:$0xff]   ;;  %v879_v47 = vld [vmem:[%s1225_s3 + $0xc4] ss:$8 sps:$4 sm:$0xff]   ;;  %v883_v48 = vld [vmem:[%s1225_s3 + $0x134] ss:$8 sps:$4 sm:$0xff]  }
  0x11   :  { %612 = vmatpush1.bf16.msra.mxu1 %v845_v17  ;;  %v881_v49 = vld [vmem:[%s1225_s3 + $0x130] ss:$8 sps:$4 sm:$0xff]   ;;  %v884_v50 = vld [vmem:[%s1225_s3 + $0xc0] ss:$8 sps:$4 sm:$0xff]   ;;  %v885_v51 = vld [vmem:[%s1225_s3 + $0xb4] ss:$8 sps:$4 sm:$0xff]  }
  0x12   :  { %164 = vmatpush1.bf16.msra.mxu0 %v820_v6  ;;  %613 = vmatprep.subr.bf16.mxu1 %v846_v18  ;;  %v889_v52 = vld [vmem:[%s1225_s3 + $0x124] ss:$8 sps:$4 sm:$0xff]   ;;  %v887_v53 = vld [vmem:[%s1225_s3 + $0x120] ss:$8 sps:$4 sm:$0xff]   ;;  %v890_v54 = vld [vmem:[%s1225_s3 + $0xb0] ss:$8 sps:$4 sm:$0xff]  }
  0x13   :  { %165 = vmatprep.subr.bf16.mxu0 %v906_v0  ;;  %v891_v55 = vld [vmem:[%s1225_s3 + $0xa4] ss:$8 sps:$4 sm:$0xff]   ;;  %v895_v56 = vld [vmem:[%s1225_s3 + $0x114] ss:$8 sps:$4 sm:$0xff]   ;;  %v893_v57 = vld [vmem:[%s1225_s3 + $0x110] ss:$8 sps:$4 sm:$0xff]  }
  0x14   :  { %v896_v58 = vld [vmem:[%s1225_s3 + $0xa0] ss:$8 sps:$4 sm:$0xff]   ;;  %v897_v59 = vld [vmem:[%s1225_s3 + $0x94] ss:$8 sps:$4 sm:$0xff]   ;;  %v901_v60 = vld [vmem:[%s1225_s3 + $0x104] ss:$8 sps:$4 sm:$0xff]  }
  0x15   :  { %614 = vmatpush1.bf16.msra.mxu1 %v848_v20  ;;  %v899_v61 = vld [vmem:[%s1225_s3 + $0x100] ss:$8 sps:$4 sm:$0xff]   ;;  %v902_v62 = vld [vmem:[%s1225_s3 + $0x90] ss:$8 sps:$4 sm:$0xff]   ;;  %v903_v63 = vld [vmem:[%s1225_s3 + $0x84] ss:$8 sps:$4 sm:$0xff]  }
  0x16   :  { %166 = vmatpush1.bf16.msra.mxu0 %v821_v10  ;;  %615 = vmatprep.subr.bf16.mxu1 %v849_v21  ;;  %v905_v1 = vld [vmem:[%s1225_s3 + $0x80] ss:$8 sps:$4 sm:$0xff]   ;;  %v1153_v7 = vshrl.u32 %v212_v3, 7 }
  0x17   :  { %167 = vmatprep.subr.bf16.mxu0 %v906_v0  ;;  %v735_v2 = vld [vmem:[%s1226_s2] ss:$0 sm:$0xff] }
  0x18   :  { %v214_v10 = vadd.s32 8, %v1153_v7  ;;  %vm290_vm1 = vcmp.lt.s32.totalorder %v1153_v7, 7  ;;  %vm273_vm3 = vcmp.lt.s32.totalorder %v1153_v7, 1 }
  0x19   :  { %616 = vmatpush1.bf16.msra.mxu1 %v851_v23  ;;  %v216_v23 = vadd.s32 24, %v1153_v7 }
  0x1a   :  { %168 = vmatpush1.bf16.msra.mxu0 %v822_v13  ;;  %617 = vmatprep.subr.bf16.mxu1 %v852_v24  ;;  %v228_v15 = vand.u32 15, %v214_v10 }
  0x1b   :  { %169 = vmatprep.subr.bf16.mxu0 %v906_v0 }
  0x1c   :  { %vm283_vm2 = vcmp.le.s32.totalorder %v228_v15, 14 }
  0x1d   :  { %618 = vmatpush1.bf16.msra.mxu1 %v854_v26  ;;  %vm808_vm5 = vmpackc.low %vm283_vm2, %vm907_vm4 }
  0x1e   :  { %170 = vmatpush1.bf16.msra.mxu0 %v823_v16  ;;  %619 = vmatprep.subr.bf16.mxu1 %v855_v27 }
  0x1f   :  { %179 = vmatprep.subr.bf16.mxu0 %v906_v0 }
  0x21   :  { %620 = vmatpush1.bf16.msra.mxu1 %v860_v29 }
  0x22   :  { %180 = vmatpush2.bf16.msra.mxu0 %v824_v19  ;;  %621 = vmatprep.subr.bf16.mxu1 %v861_v31 }
  0x23   :  { %181 = vmatprep.subr.bf16.mxu0 %v906_v0 }
  0x25   :  { %622 = vmatpush2.bf16.msra.mxu1 %v866_v36 }
  0x26   :  { %182 = vmatpush2.bf16.msra.mxu0 %v825_v22  ;;  %623 = vmatprep.subr.bf16.mxu1 %v867_v37  ;;  %v221_v22 = vand.u32 15, %v1153_v7 }
  0x27   :  { %183 = vmatprep.subr.bf16.mxu0 %v906_v0 }
  0x28   :  { %vm265_vm6 = vcmp.ge.s32.totalorder %v221_v22, 1 }
  0x29   :  { %624 = vmatpush2.bf16.msra.mxu1 %v872_v40  ;;  %vm802_vm7 = vmpackc.low %vm907_vm4, %vm265_vm6 }
  0x2a   :  { %184 = vmatpush2.bf16.msra.mxu0 %v826_v25  ;;  %625 = vmatprep.subr.bf16.mxu1 %v873_v41 }
  0x2b   :  { %185 = vmatprep.subr.bf16.mxu0 %v906_v0 }
  0x2d   :  { %626 = vmatpush2.bf16.msra.mxu1 %v878_v45 }
  0x2e   :  { %186 = vmatpush2.bf16.msra.mxu0 %v827_v28  ;;  %627 = vmatprep.subr.bf16.mxu1 %v879_v47 }
  0x2f   :  { %658 = vmatprep.subr.bf16.mxu0 %v859_v30 }
  0x31   :  { %188 = vmatmul.mubr.bf16.vlgmr.msra.gmra.mxu0 %v828_v32  ;;  %628 = vmatpush2.bf16.msra.mxu1 %v884_v50  ;;  %v353_v50 = vld [vmem:[%s1228_s4] sm:$0x3] }
  0x32   :  { %753 = vmatprep.mubr.msk.bf16.mxu0 %vm148_vm0, %v831_v33  ;;  %659 = vmatpush1.bf16.msra.mxu0 %v857_v34  ;;  %v242_v33 = vand.u32 15, %v216_v23  ;;  %v215_v34 = vadd.s32 16, %v1153_v7 }
  0x33   :  { %660 = vmatprep.subr.bf16.mxu0 %v865_v35  ;;  %629 = vmatprep.subr.bf16.mxu1 %v885_v51  ;;  %v361_v51 = vsub.s32 1, %v1153_v7 }
  0x34   :  { %vm285_vm8 = vcmp.le.s32.totalorder %v242_v33, 14  ;;  %v235_v41 = vand.u32 15, %v215_v34 }
  0x35   :  { %630 = vmatpush2.bf16.msra.mxu1 %v890_v54  ;;  %vm811_vm9 = vmpackc.low %vm285_vm8, %vm907_vm4 }
  0x36   :  { %661 = vmatpush1.bf16.msra.mxu0 %v863_v38  ;;  %631 = vmatprep.subr.bf16.mxu1 %v891_v55  ;;  %vm267_vm10 = vcmp.ge.s32.totalorder %v235_v41, 1  ;;  %v362_v55 = vrot.slane %v353_v50, %v361_v51 }
  0x37   :  { %662 = vmatprep.subr.bf16.mxu0 %v871_v39  ;;  %vm805_vm11 = vmpackc.low %vm907_vm4, %vm267_vm10 }
  0x39   :  { %196 = vmatmul.mubr.bf16.gmra.mxu0 %v833_v42  ;;  %632 = vmatpush2.bf16.msra.mxu1 %v896_v58 }
  0x3a   :  { %663 = vmatpush1.bf16.msra.mxu0 %v869_v43  ;;  %690 = vmatprep.mubr.bf16.mxu0 %v906_v0 }
  0x3b   :  { %664 = vmatprep.subr.bf16.mxu0 %v877_v44  ;;  %633 = vmatprep.subr.bf16.mxu1 %v897_v59 }
  0x3d   :  { %634 = vmatpush2.bf16.msra.mxu1 %v902_v62 }
  0x3e   :  { %665 = vmatpush1.bf16.msra.mxu0 %v875_v46  ;;  %635 = vmatprep.subr.bf16.mxu1 %v903_v63 }
  0x3f   :  { %666 = vmatprep.subr.bf16.mxu0 %v883_v48 }
  0x41   :  { %636 = vmatpush2.bf16.msra.mxu1 %v905_v1 }
  0x42   :  { %667 = vmatpush1.bf16.msra.mxu0 %v881_v49  ;;  %v357_v49 = vsub.s32 0, %v1153_v7 }
  0x43   :  { %668 = vmatprep.subr.bf16.mxu0 %v889_v52 }
  0x46   :  { %669 = vmatpush1.bf16.msra.mxu0 %v887_v53  ;;  %v358_v53 = vrot.slane %v353_v50, %v357_v49 }
  0x47   :  { %670 = vmatprep.subr.bf16.mxu0 %v895_v56 }
  0x4a   :  { %671 = vmatpush1.bf16.msra.mxu0 %v893_v57 }
  0x4b   :  { %672 = vmatprep.subr.bf16.mxu0 %v901_v60 }
  0x4e   :  { %673 = vmatpush1.bf16.msra.mxu0 %v899_v61 }
  0xf1   :  { %v189_v4 = vpop.f32.mrf.mxu0 }
  0xf2   :  { %v190_v5 = vadd.f32 %v735_v2, %v189_v4 }
  0xf3   :  { %v191_v6 = vpop.f32.mrf.mxu0 }
  0xf4   :  { %v204_v8 = vmax.f32 %v190_v5, 0.0 }
  0xf5   :  { %v192_v9 = vpop.f32.mrf.mxu0 }
  0xf6   :  { %208 = vst [vmem:[%s1227_s5] sm:$0xff] %v204_v8  ;;  %v193_v11 = vadd.f32 %v735_v2, %v192_v9  ;;  %v286_v24 = vrot.slane %v204_v8, 1  ;;  %v269_v35 = vrot.slane %v204_v8, 7 }
  0xf7   :  { %v194_v12 = vpop.f32.mrf.mxu0 }
  0xf8   :  { %v205_v13 = vmax.f32 %v193_v11, 0.0 }
  0xf9   :  { %v197_v14 = vpop.f32.mrf.mxu0 }
  0xfa   :  { %209 = vst [vmem:[%s1227_s5 + $0x8] sm:$0xff] %v205_v13  ;;  %v198_v16 = vadd.f32 %v735_v2, %v197_v14  ;;  %v300_v17 = vpack.c.bf16 %v205_v13, %v204_v8  ;;  %v287_v19 = vrot.slane %v205_v13, 1  ;;  %v270_v28 = vrot.slane %v205_v13, 7 }
  0xfb   :  { %v199_v18 = vpop.f32.mrf.mxu0 }
  0xfc   :  { %v206_v20 = vmax.f32 %v198_v16, 0.0  ;;  %637 = vmatprep.mubr.bf16.mxu1 %v300_v17  ;;  %v293_v29 = vsel %vm290_vm1, %v286_v24, %v287_v19  ;;  %v276_v38 = vsel %vm273_vm3, %v269_v35, %v270_v28 }
  0xfd   :  { %v200_v21 = vpop.f32.mrf.mxu0 }
  0xfe   :  { %210 = vst [vmem:[%s1227_s5 + $0x10] sm:$0xff] %v206_v20  ;;  %v288_v25 = vrot.slane %v206_v20, 1  ;;  %v201_v26 = vadd.f32 %v735_v2, %v200_v21  ;;  %v271_v45 = vrot.slane %v206_v20, 7 }
  0xff   :  { %v202_v27 = vpop.f32.mrf.mxu0 }
 0x100   :  { %v292_v30 = vsel %vm290_vm1, %v287_v19, %v288_v25  ;;  %v207_v31 = vmax.f32 %v201_v26, 0.0  ;;  %v275_v47 = vsel %vm273_vm3, %v270_v28, %v271_v45 }
 0x101   :  { %v809_v32 = vpack.c.bf16 %v292_v30, %v293_v29 }
 0x102   :  { %211 = vst [vmem:[%s1227_s5 + $0x18] sm:$0xff] %v207_v31  ;;  %v272_v36 = vrot.slane %v207_v31, 7  ;;  %v289_v37 = vrot.slane %v207_v31, 1  ;;  %v303_v42 = vpack.c.bf16 %v207_v31, %v206_v20 }
 0x103   :  { %810 = vmatmul.mubr.msk.bf16.vlgmr.msra.gmra.mxu0 %vm808_vm5, %v809_v32 }
 0x104   :  { %v277_v39 = vsel %vm273_vm3, %v272_v36, %v269_v35  ;;  %700 = vmatprep.mubr.bf16.mxu0 %v906_v0  ;;  %v291_v43 = vsel %vm290_vm1, %v288_v25, %v289_v37  ;;  %v294_v44 = vsel %vm290_vm1, %v289_v37, %v286_v24  ;;  %v274_v0 = vsel %vm273_vm3, %v271_v45, %v272_v36 }
 0x105   :  { %v803_v40 = vpack.c.bf16 %v276_v38, %v277_v39  ;;  %v812_v46 = vpack.c.bf16 %v294_v44, %v291_v43  ;;  %v806_v48 = vpack.c.bf16 %v274_v0, %v275_v47 }
 0x107   :  { %804 = vmatmul.mubr.msk.bf16.vlgmr.msra.gmra.mxu1 %vm802_vm7, %v803_v40 }
 0x108   :  { %647 = vmatprep.mubr.bf16.mxu1 %v303_v42 }
 0x10b   :  { %813 = vmatmul.mubr.msk.bf16.gmra.mxu0 %vm811_vm9, %v812_v46 }
 0x10f   :  { %807 = vmatmul.mubr.msk.bf16.gmra.mxu1 %vm805_vm11, %v806_v48 }
 0x1c3   :  { %v692_v52 = vpop.f32.mrf.mxu0 }
 0x1c5   :  { %v694_v54 = vpop.f32.mrf.mxu0 }
 0x1c7   :  { %v639_v56 = vpop.f32.mrf.mxu1  ;;  %v696_v57 = vpop.f32.mrf.mxu0 }
 0x1c8   :  { %v640_v58 = vadd.f32 %v639_v56, %v358_v53 }
 0x1c9   :  { %v641_v59 = vpop.f32.mrf.mxu1  ;;  %v698_v60 = vpop.f32.mrf.mxu0 }
 0x1ca   :  { %v693_v61 = vadd.f32 %v692_v52, %v640_v58  ;;  %v642_v62 = vadd.f32 %v641_v59, %v362_v55 }
 0x1cb   :  { %v643_v63 = vpop.f32.mrf.mxu1  ;;  %v702_v1 = vpop.f32.mrf.mxu0 }
 0x1cc   :  { %v711_v2 = vmax.f32 %v693_v61, 0.0  ;;  %v695_v3 = vadd.f32 %v694_v54, %v642_v62  ;;  %v644_v4 = vadd.f32 %v643_v63, %v358_v53 }
 0x1cd   :  { %v645_v5 = vpop.f32.mrf.mxu1  ;;  %v704_v9 = vpop.f32.mrf.mxu0 }
 0x1ce   :  { %719 = vst [vmem:[%s1229_s6] sm:$0xff] %v711_v2  ;;  %v712_v6 = vmax.f32 %v695_v3, 0.0  ;;  %v697_v7 = vadd.f32 %v696_v57, %v644_v4  ;;  %v646_v8 = vadd.f32 %v645_v5, %v362_v55 }
 0x1cf   :  { %v649_v10 = vpop.f32.mrf.mxu1  ;;  %v706_v18 = vpop.f32.mrf.mxu0 }
 0x1d0   :  { %720 = vst [vmem:[%s1229_s6 + $0x8] sm:$0xff] %v712_v6  ;;  %v713_v11 = vmax.f32 %v697_v7, 0.0  ;;  %v699_v12 = vadd.f32 %v698_v60, %v646_v8  ;;  %v650_v13 = vadd.f32 %v649_v10, %v358_v53 }
 0x1d1   :  { %v651_v14 = vpop.f32.mrf.mxu1  ;;  %v708_v27 = vpop.f32.mrf.mxu0 }
 0x1d2   :  { %721 = vst [vmem:[%s1229_s6 + $0x10] sm:$0xff] %v713_v11  ;;  %v714_v15 = vmax.f32 %v699_v12, 0.0  ;;  %v703_v16 = vadd.f32 %v702_v1, %v650_v13  ;;  %v652_v17 = vadd.f32 %v651_v14, %v362_v55 }
 0x1d3   :  { %v653_v19 = vpop.f32.mrf.mxu1 }
 0x1d4   :  { %722 = vst [vmem:[%s1229_s6 + $0x18] sm:$0xff] %v714_v15  ;;  %v715_v20 = vmax.f32 %v703_v16, 0.0  ;;  %v705_v21 = vadd.f32 %v704_v9, %v652_v17  ;;  %v654_v22 = vadd.f32 %v653_v19, %v358_v53 }
 0x1d5   :  { %v655_v23 = vpop.f32.mrf.mxu1 }
 0x1d6   :  { %723 = vst [vmem:[%s1229_s6 + $0x20] sm:$0xff] %v715_v20  ;;  %v716_v24 = vmax.f32 %v705_v21, 0.0  ;;  %v707_v25 = vadd.f32 %v706_v18, %v654_v22  ;;  %v656_v26 = vadd.f32 %v655_v23, %v362_v55 }
 0x1d8   :  { %724 = vst [vmem:[%s1229_s6 + $0x28] sm:$0xff] %v716_v24  ;;  %v717_v28 = vmax.f32 %v707_v25, 0.0  ;;  %v709_v29 = vadd.f32 %v708_v27, %v656_v26 }
 0x1da   :  { %725 = vst [vmem:[%s1229_s6 + $0x30] sm:$0xff] %v717_v28  ;;  %v718_v30 = vmax.f32 %v709_v29, 0.0 }
 0x1dc   :  { %726 = vst [vmem:[%s1229_s6 + $0x38] sm:$0xff] %v718_v30 }

</bundles_post_ra>
